<compile_context>
chip_gen: v7x
topology: tpu7x:2x2x1
jax: 0.10.0
libtpu: 0.0.40
codegen_flags: <defaults>
</compile_context>

<pallas_src>
import jax
import jax.numpy as jnp
from jax.experimental import pallas as pl
from jax.experimental.pallas import tpu as pltpu


def _drop_path_kernel(scale_ref, x_ref, o_ref):
    # scale_ref: SMEM (B,) float32, values in {0, 1/keep_prob}
    # x_ref / o_ref: VMEM (1, tn, lane) lane-dense tile of sample b
    b = pl.program_id(1)
    scale = scale_ref[b].astype(o_ref.dtype)     # scalar; multiply in native dtype
    o_ref[...] = x_ref[...] * scale


def _round_up(v, m):
    return ((v + m - 1) // m) * m


def _sublane_packing(dtype):
    # f32 -> 8, bf16 -> 16, int8/fp8 -> 32 rows per packed sublane tile.
    return max(8, 32 // jnp.dtype(dtype).itemsize)


def _tile_budget():
    """Per-generation (tile bytes, optional scoped-VMEM override)."""
    try:
        kind = jax.devices()[0].device_kind.lower()
    except Exception:
        kind = ""
    if "v7" in kind:
        # 3.2 TB/s HBM: amortize ~0.35us/step with big tiles; 4 x 8 MiB
        # double-buffered in+out exceeds the 32 MiB scoped default -> raise it
        # (still well inside the 64 MiB physical VMEM).
        return 8 << 20, 48 << 20
    if "v6" in kind:
        return 4 << 20, None       # 4 x 4 MiB fits the 32 MiB scoped default
    return 2 << 20, None           # v5e (16 MiB scoped default) & unknown: stay safe


def _choose_lane(total, last_dim):
    """Lane width (multiple of 128). Returns (lane, needs_pad)."""
    if total % 128 == 0:
        if last_dim % 128 == 0 and last_dim <= 4096:
            return last_dim, False              # natural layout, reshape is free
        for lane in (1024, 512, 384, 256, 128):
            if total % lane == 0:
                return lane, False              # divides exactly -> no padding
    # No clean 128-multiple divisor: pad the flattened slab (rare fallback).
    return (512 if total >= 512 else _round_up(max(total, 1), 128)), True


def drop_path_pallas(x, drop_prob: float, key, training: bool = True):
    """Pallas DropPath. x: (B, ...) — mask is per leading (batch) dim."""
    if drop_prob == 0.0 or not training:
        return x
    keep_prob = 1.0 - drop_prob
    orig_shape = x.shape
    B = int(orig_shape[0])
    total = 1
    for d in orig_shape[1:]:
        total *= int(d)
    total = max(total, 1)

    # Per-sample keep mask: floor(keep_prob + U[0,1)) == Bernoulli(keep_prob)
    rnd = jax.random.uniform(key, (B,), dtype=jnp.float32)
    scale = (jnp.floor(keep_prob + rnd) / keep_prob).astype(jnp.float32)  # {0, 1/kp}

    dtype_bytes = jnp.dtype(x.dtype).itemsize
    packing = _sublane_packing(x.dtype)
    target_tile_bytes, vmem_limit = _tile_budget()

    last_dim = int(orig_shape[-1]) if x.ndim >= 2 else total
    lane, needs_pad = _choose_lane(total, last_dim)

    if needs_pad:
        rows = pl.cdiv(total, lane)
        padded_total = rows * lane
        x_tiled = jnp.pad(x.reshape(B, total), ((0, 0), (0, padded_total - total)))
        x_tiled = x_tiled.reshape(B, rows, lane)
    else:
        rows = total // lane
        padded_total = total
        x_tiled = x.reshape(B, rows, lane)      # contiguous reinterpretation: free

    # Row tile: whole per-sample slab if it fits the budget (no edge masking),
    # otherwise a packing-aligned tile; Pallas masks the partial edge block.
    rows_fit = max(1, target_tile_bytes // (lane * dtype_bytes))
    if rows <= rows_fit:
        tn = rows
    else:
        tn = max(packing, (rows_fit // packing) * packing)
    row_tiles = pl.cdiv(rows, tn)

    grid = (row_tiles, B)   # row axis first: keeps v7x's 2 TCs busy when B is tiny
    grid_spec = pltpu.PrefetchScalarGridSpec(
        num_scalar_prefetch=1,                   # `scale` lands in SMEM
        grid=grid,
        in_specs=[
            pl.BlockSpec((1, tn, lane), lambda t, b, scale_ref: (b, t, 0)),
        ],
        out_specs=pl.BlockSpec((1, tn, lane), lambda t, b, scale_ref: (b, t, 0)),
    )

    out_tiled = pl.pallas_call(
        _drop_path_kernel,
        out_shape=jax.ShapeDtypeStruct(x_tiled.shape, x.dtype),
        grid_spec=grid_spec,
        compiler_params=pltpu.CompilerParams(
            dimension_semantics=("parallel", "parallel"),
            vmem_limit_bytes=vmem_limit,
        ),
    )(scale, x_tiled)

    if needs_pad:
        out = out_tiled.reshape(B, padded_total)[:, :total]
        return out.reshape(orig_shape)
    return out_tiled.reshape(orig_shape)


class DropPath:
    """Mirror of the PyTorch module. drop_prob=None means identity."""

    def __init__(self, drop_prob=None):
        self.drop_prob = drop_prob
        self.training = True

    def __call__(self, x, key):
        p = 0.0 if self.drop_prob is None else float(self.drop_prob)
        return drop_path_pallas(x, p, key, training=self.training)


if __name__ == "__main__":
    key = jax.random.PRNGKey(0)
    k_x, k_drop, k_x2, k_x3, k_x4 = jax.random.split(key, 5)

    drop_prob = 0.5
    keep_prob = 1.0 - drop_prob
    module = DropPath(drop_prob)
    module.training = True

    def ref_drop(x, k):
        rnd = jax.random.uniform(k, (x.shape[0],), dtype=jnp.float32)
        mask = jnp.floor(keep_prob + rnd)
        bshape = (x.shape[0],) + (1,) * (x.ndim - 1)
        return (x.astype(jnp.float32) / keep_prob * mask.reshape(bshape)).astype(x.dtype)

    # --- f32, total % 128 == 0 via lane=256 (no pad, no copies) ---
    x = jax.random.normal(k_x, (2, 8, 32), dtype=jnp.float32)
    out = jax.block_until_ready(module(x, k_drop))
    assert out.shape == x.shape and out.dtype == x.dtype
    assert jnp.allclose(out, ref_drop(x, k_drop), atol=1e-6, rtol=1e-6)

    # --- f32, total=3840 -> lane=384 divisor path (no pad) ---
    x2 = jax.random.normal(k_x2, (2, 40, 96), dtype=jnp.float32)
    out2 = jax.block_until_ready(module(x2, k_drop))
    assert out2.shape == x2.shape and out2.dtype == x2.dtype
    assert jnp.allclose(out2, ref_drop(x2, k_drop), atol=1e-6, rtol=1e-6)

    # --- bf16, C=128 -> natural lane-dense path, native-dtype multiply ---
    x3 = jax.random.normal(k_x3, (2, 16, 128), dtype=jnp.bfloat16)
    out3 = jax.block_until_ready(module(x3, k_drop))
    assert out3.shape == x3.shape and out3.dtype == x3.dtype
    assert jnp.allclose(out3.astype(jnp.float32), ref_drop(x3, k_drop).astype(jnp.float32),
                        atol=2e-2, rtol=2e-2)

    # --- f32, total=120 not a multiple of 128 -> pad fallback path ---
    x4 = jax.random.normal(k_x4, (2, 5, 24), dtype=jnp.float32)
    out4 = jax.block_until_ready(module(x4, k_drop))
    assert out4.shape == x4.shape and out4.dtype == x4.dtype
    assert jnp.allclose(out4, ref_drop(x4, k_drop), atol=1e-6, rtol=1e-6)

    # --- eval path / drop_prob == 0 -> identity ---
    module.training = False
    out_eval = jax.block_until_ready(module(x, k_drop))
    assert jnp.allclose(out_eval, x)

    print("KERNEL_OK")
</pallas_src>

<mosaic_0001>
module attributes {stable_mosaic.version = 11 : i64} {
  func.func @_drop_path_kernel(%arg0: i32, %arg1: i32, %arg2: memref<2xf32, #tpu.memory_space<smem>>, %arg3: memref<1x1x256xf32, #tpu.memory_space<vmem>>, %arg4: memref<1x1x256xf32, #tpu.memory_space<vmem>>) attributes {dimension_semantics = [#tpu.dimension_semantics<parallel>, #tpu.dimension_semantics<parallel>], iteration_bounds = array<i64: 1, 2>, scalar_prefetch = 1 : i64, scratch_operands = 0 : i64, tpu.core_type = #tpu.core_type<tc>, window_params = [{transform_indices = @transform_0, window_bounds = array<i64: 1, 1, 256>}, {transform_indices = @transform_1, window_bounds = array<i64: 1, 1, 256>}]} {
    %0 = arith.index_cast %arg1 : i32 to index
    %1 = memref.load %arg2[%0] : memref<2xf32, #tpu.memory_space<smem>>
    %c0 = arith.constant 0 : index
    %c0_0 = arith.constant 0 : index
    %c0_1 = arith.constant 0 : index
    %2 = vector.load %arg3[%c0, %c0_0, %c0_1] : memref<1x1x256xf32, #tpu.memory_space<vmem>>, vector<1x1x256xf32>
    %3 = vector.broadcast %1 : f32 to vector<1x1x256xf32>
    %4 = arith.mulf %2, %3 : vector<1x1x256xf32>
    %c0_2 = arith.constant 0 : index
    %c0_3 = arith.constant 0 : index
    %c0_4 = arith.constant 0 : index
    %5 = vector.load %arg4[%c0_2, %c0_3, %c0_4] : memref<1x1x256xf32, #tpu.memory_space<vmem>>, vector<1x1x256xf32>
    tpu.vector_store %arg4[%c0_2, %c0_3, %c0_4], %4 {strides = array<i32>} : memref<1x1x256xf32, #tpu.memory_space<vmem>>, vector<1x1x256xf32>,
    return
  }
  func.func @transform_0(%arg0: i32, %arg1: i32, %arg2: memref<2xf32, #tpu.memory_space<smem>>) -> (i32, i32, i32) {
    %c0_i32 = arith.constant 0 : i32
    %c0_i32_0 = arith.constant 0 : i32
    return %arg1, %arg0, %c0_i32 : i32, i32, i32
  }
  func.func @transform_1(%arg0: i32, %arg1: i32, %arg2: memref<2xf32, #tpu.memory_space<smem>>) -> (i32, i32, i32) {
    %c0_i32 = arith.constant 0 : i32
    %c0_i32_0 = arith.constant 0 : i32
    return %arg1, %arg0, %c0_i32 : i32, i32, i32
  }
}

</mosaic_0001>

<bundles_post_ra>
// kernel: tpu_custom_call.1
= control target key start
LH: loop header
LB: loop body
LE: loop exit
PB: predicated region body
PF: predicated region fallthrough
CT: control target
= control target key end

     0   :  { %s675_s0 = inlined_call_operand.hbm [shape: f32[2], index: 0, kind: input, shape index: {}]   ;;  %s676_s1 = inlined_call_operand.hbm [shape: f32[2,1,256], index: 1, kind: input, shape index: {}]   ;;  %s677_s2 = inlined_call_operand.hbm [shape: f32[2,1,256], index: 2, kind: output, shape index: {}]  }
   0x1   :  { %s346_s11 = scalar_lea.hbm %s675_s0, 16 }
   0x2   :  { %p347_p0 = scmp.ne.s32.totalorder %s675_s0, %s346_s11  ;;  %p350_p1 = scmp.lt.u32.totalorder %s346_s11, %s675_s0 }
   0x4   :  { %p352_p2 = pnand %p350_p1, %p347_p0 }
   0x6   :  { %355 = shalt.err (!%p352_p2)  }
   0x7   :  { %s472_s16 = smov [#allocation3]  }
   0x8   :  { %8 = dma.hbm_to_smem %s675_s0, 16, %s472_s16, [#allocation2] }
   0x9   :  { %438 = dma.done.wait [#allocation2], 16 }
   0xa   :  { %439 = vsyncadd [#allocation2], 4294967280 }
   0xb   :  { %10 = sfence }
   0xc   :  { %11 = vsyncpa [#allocation5], 0 }
   0xd   :  { %13 = vsyncpa [#allocation5 + $0x1], 0 }
   0xe   :  { %14 = vsyncpa [#allocation6], 0 }
   0xf   :  { %16 = vsyncpa [#allocation6 + $0x1], 0  ;;  %s502_s19 = smov 0   ;;  %s504_s20 = smov 0  }
  0x10   :  { %s506_s21 = smov 0   ;;  %s508_s22 = smov 0  }
  0x11   :  { %s510_s23 = smov 0   ;;  %s512_s24 = smov 0  }
  0x12 LB: > { %s266_s0 = sadd.s32 4294967295, %s470_s24   ;;  %s267_s25 = sadd.s32 4294967294, %s470_s24   ;;  %s470_s24 = sphi %s512_s24, %s22_s24   ;;  %s466_s23 = sphi %s510_s23, %s693_s23   ;;  %s462_s22 = sphi %s508_s22, %s692_s22   ;;  %s458_s21 = sphi %s506_s21, %s691_s21   ;;  %s454_s20 = sphi %s504_s20, %s690_s20   ;;  %s450_s19 = sphi %s502_s19, %s689_s19  }
  0x13   : > { %s31_s26 = sadd.s32 1, %s466_s23  ;;  %s43_s27 = sadd.s32 1, %s458_s21 }
  0x14   : > { %p32_p3 = scmp.ge.s32.totalorder %s31_s26, 2  ;;  %p50_p4 = scmp.ne.s32.totalorder %s458_s21, %s454_s20 }
  0x15   : > { %p51_p5 = scmp.eq.s32.totalorder %s470_s24, 0  ;;  %p56_p6 = scmp.ne.s32.totalorder %s454_s20, %s450_s19 }
  0x16   : > { %s695_s26 = smov (%p32_p3, %s31_s26), 0  ;;  %p57_p8 = scmp.eq.s32.totalorder %s266_s0, 0 }
  0x17   : > { %p543_p7 = por %p51_p5, %p50_p4  ;;  %s38_s29 = ssub.s32 %s466_s23, %s695_s26 }
  0x18   : > { %p82_p9 = scmp.eq.s32.totalorder %s266_s0, 1  ;;  %p41_p10 = scmp.eq.s32.totalorder %s38_s29, 0 }
  0x19   : > { %p549_p11 = por %p57_p8, %p56_p6  ;;  %p88_p13 = scmp.eq.s32.totalorder %s267_s25, 1 }
  0x1a   : > { %p553_p12 = por %p82_p9, %p50_p4  ;;  %p295_p2 = scmp.lt.s32.totalorder %s470_s24, 2 }
  0x1b   : > { %s558_s4 = scalar_select %p41_p10, %s458_s21, %s43_s27  }
  0x1c   : > { %s681_s3 = scalar_select %p553_p12, 1, 0 }
  0x1d   : > { %p560_p0 = por %p88_p13, %p56_p6  ;;  %s108_s6 = sand.u32 1, %s458_s21  }
  0x1e   : > { %s270_s7 = sshll.u32 %s108_s6, 1  ;;  %s281_s8 = sshll.u32 %s466_s23, 5 }
  0x1f   : > { %s682_s5 = scalar_select %p560_p0, 1, 0 }
  0x20   : > { %s571_s11 = scalar_lea.hbm %s676_s1, %s281_s8  ;;  %s112_s12 = scalar_lea.vmem [#allocation4], %s270_s7 }
  0x21   : > { %s122_s13 = sshll.u32 %s112_s12, 4  ;;  %p577_p3 = pnand %p295_p2, %p543_p7  ;;  %s573_s13 = int_to_ptr.vmem [resolvable:$true] %s122_s13 }
  0x22   : > { %s109_s15 = scalar_lea.sflag [#allocation5], %s108_s6  ;;  %s356_s16 = scalar_lea.hbm %s571_s11, 32 }
  0x23   : > { %p357_p6 = scmp.ne.s32.totalorder %s571_s11, %s356_s16  ;;  %p358_p8 = pneg %p577_p3 }
  0x24   : > { %s361_s0 = scalar_lea.hbm %s676_s1, 64  ;;  %p362_p7 = scmp.lt.u32.totalorder %s571_s11, %s676_s1 }
  0x25   : > { %p359_p9 = pnand %p358_p8, %p357_p6  ;;  %p363_p13 = scmp.lt.u32.totalorder %s361_s0, %s356_s16 }
  0x26   : > { %p365_p1 = scmp.lt.u32.totalorder %s356_s16, %s571_s11 }
  0x27   : > { %p360_p10 = pneg %p359_p9  ;;  %p364_p2 = por %p363_p13, %p362_p7 }
  0x29   : > { %p366_p4 = por %p365_p1, %p364_p2 }
  0x2b   : > { %p367_p5 = pnand %p366_p4, %p360_p10 }
  0x2d   : > { %370 = shalt.err (!%p367_p5)
}
  0x2e   : > { %s371_s28 = scalar_lea.vmem %s573_s13, 32  ;;  %s473_s29 = smov [#allocation4]  }
  0x2f   : > { %p372_p6 = scmp.ne.s32.totalorder %s573_s13, %s371_s28  ;;  %s376_s6 = sshll.u32 %s473_s29, 4  ;;  %s377_s6 = int_to_ptr.vmem [resolvable:$false] %s376_s6 }
  0x30   : > { %s378_s7 = scalar_lea.vmem %s377_s6, 64  ;;  %p379_p12 = scmp.lt.s32.totalorder %s573_s13, %s377_s6 }
  0x31   : > { %p374_p9 = pnand %p372_p6, %p358_p8  ;;  %p380_p7 = scmp.lt.s32.totalorder %s378_s7, %s371_s28 }
  0x33   : > { %p375_p0 = pneg %p374_p9  ;;  %p381_p13 = por %p380_p7, %p379_p12 }
  0x35   : > { %p382_p1 = pnand %p381_p13, %p375_p0 }
  0x37   : > { %385 = shalt.err (!%p382_p1)
}
  0x38   : > { %290 = dma.hbm_to_vmem [thread:$0]  (!%p577_p3), %s571_s11, 32, %s573_s13, %s109_s15  }
  0x39   : > { %p684_p4 = scmp.lt.s32.totalorder %s470_s24, 3  ;;  %p685_p5 = scmp.ge.s32.totalorder %s470_s24, 1 }
  0x3b   : > { %p128_p8 = pnand %p685_p5, %p684_p4 }
  0x3c   : > { %s613_s8 = sand.u32 (!%p128_p8), 1, %s454_s20  }
  0x3d   : > { %131 = sbr.rel (%p128_p8) target bundleno = 95 (0x5f), region = 24  ;;  %s274_s9 = sshll.u32 (!%p128_p8), %s613_s8, 1 }
  0x3e   : > { %s134_s10 = scalar_lea.sflag (!%p128_p8), [#allocation5], %s613_s8  ;;  %s137_s12 = scalar_lea.vmem (!%p128_p8), [#allocation4], %s274_s9 }
  0x44   : > { %441 = dma.done.wait (%p549_p11), %s134_s10, 32  }
  0x45   : > { %443 = vsyncadd (%p549_p11), %s134_s10, 4294967264  ;;  %s156_s11 = sld [smem:[#allocation3 + %s462_s22]]  ;;  %v160_v0 = vlaneseq  ;;  %s155_s13 = scalar_lea.vmem [#allocation7], %s274_s9  ;;  %v157_v1 = vld [vmem:[%s137_s12] sm:$0x3] }
  0x46   : > { %s182_s14 = sshll.u32 %s155_s13, 4  ;;  %s282_s15 = sshll.u32 %s462_s22, 5  ;;  %s623_s14 = int_to_ptr.vmem [resolvable:$true] %s182_s14 }
  0x47   : > { %vm162_vm0 = vcmp.lt.s32.totalorder %v160_v0, 256  ;;  %s628_s30 = scalar_lea.hbm %s677_s2, %s282_s15  ;;  %s166_s18 = scalar_lea.sflag [#allocation6], %s613_s8 }
  0x48   : > { %s386_s0 = scalar_lea.vmem %s623_s14, 32  ;;  %p686_p12 = scmp.ne.s32.totalorder %s681_s3, 0 }
  0x49   : > { %p387_p11 = scmp.ne.s32.totalorder %s623_s14, %s386_s0  ;;  %s474_s22 = smov [#allocation7]  }
  0x4a   : > { %s390_s25 = sshll.u32 %s474_s22, 4  ;;  %s391_s25 = int_to_ptr.vmem [resolvable:$false] %s390_s25 }
  0x4b   : > { %v158_v2 = vstv %s156_s11  ;;  %p388_p0 = pnand %p387_p11, %p686_p12  ;;  %s392_s27 = scalar_lea.vmem %s391_s25, 64 }
  0x4c   : > { %v159_v3 = vmul.f32 %v158_v2, %v157_v1  ;;  %p393_p10 = scmp.lt.s32.totalorder %s623_s14, %s391_s25  ;;  %p394_p2 = scmp.lt.s32.totalorder %s392_s27, %s386_s0 }
  0x4d   : > { %p389_p3 = pneg %p388_p0 }
  0x4e   : > { %164 = vst.msk [vmem:[%s155_s13] sm:$0x3] %vm162_vm0, %v159_v3  ;;  %p395_p6 = por %p394_p2, %p393_p10 }
  0x50   : > { %p396_p9 = pnand %p395_p6, %p389_p3 }
  0x52   : > { %399 = shalt.err (!%p396_p9)
}
  0x53   : > { %s400_s28 = scalar_lea.hbm %s628_s30, 32  ;;  %s404_s7 = scalar_lea.hbm %s677_s2, 64 }
  0x54   : > { %p401_p7 = scmp.ne.s32.totalorder %s628_s30, %s400_s28  ;;  %p405_p4 = scmp.lt.u32.totalorder %s628_s30, %s677_s2 }
  0x55   : > { %p406_p5 = scmp.lt.u32.totalorder %s404_s7, %s400_s28  ;;  %p408_p11 = scmp.lt.u32.totalorder %s400_s28, %s628_s30 }
  0x56   : > { %p402_p13 = pnand %p401_p7, %p686_p12 }
  0x57   : > { %p407_p8 = por %p406_p5, %p405_p4 }
  0x58   : > { %p403_p1 = pneg %p402_p13 }
  0x59   : > { %p409_p0 = por %p408_p11, %p407_p8 }
  0x5b   : > { %p410_p3 = pnand %p409_p0, %p403_p1 }
  0x5d   : > { %413 = shalt.err (!%p410_p3)
}
  0x5e   : > { %285 = dma.vmem_to_hbm [thread:$0]  (%p686_p12), %s623_s14, 32, %s628_s30, %s166_s18  }
  0x5f PF: > { %s194_s10 = sand.u32 1, %s450_s19   ;;  %p687_p10 = scmp.ne.s32.totalorder %s682_s5, 0 }
  0x60   : > { %p688_p2 = scmp.ge.s32.totalorder %s470_s24, 2  ;;  %s195_s12 = scalar_lea.sflag [#allocation6], %s194_s10 }
  0x62   : > { %p292_p6 = pnand %p688_p2, %p687_p10 }
  0x64   : > { %445 = dma.done.wait (!%p292_p6), %s195_s12, 32  }
  0x65   : > { %447 = vsyncadd (!%p292_p6), %s195_s12, 4294967264  ;;  %s22_s24 = sadd.s32 1, %s470_s24   ;;  %s689_s19 = smov %s454_s20 }
  0x66   : > { %p19_p9 = scmp.ge.s32.totalorder %s22_s24, 4   ;;  %s690_s20 = smov %s458_s21 }
  0x67   : > { %s691_s21 = smov %s558_s4  ;;  %s692_s22 = smov %s466_s23 }
  0x68   : > { %s693_s23 = smov %s695_s26  ;;  %21 = sbr.rel (!%p19_p9) target bundleno = 18 (0x12), region = 69 }
  0x6f   :  { %200 = vsyncpa [#allocation5], 1 }
  0x70   :  { %202 = vsyncpa [#allocation5 + $0x1], 1 }
  0x71   :  { %203 = vsyncpa [#allocation6], 1 }
  0x72   :  { %205 = vsyncpa [#allocation6 + $0x1], 1 }

</bundles_post_ra>
